<compile_context>
chip_gen: v7x
topology: tpu7x:2x2x1
jax: 0.10.0
libtpu: 0.0.40
codegen_flags: <defaults>
</compile_context>

<pallas_src>
import functools

import jax
import jax.numpy as jnp
from jax.experimental import pallas as pl
from jax.experimental.pallas import tpu as pltpu


def _meta_model_kernel(x_ref, w1_ref, b1_ref, w2_ref, b2_ref, w3_ref, b3_ref,
                       o_ref):
    """sigmoid(W3 . relu(W2 @ relu(W1 @ x + b1) + b2) + b3), x is [F, TB]."""
    x = x_ref[...]                                              # [F, TB], f32

    # fc1 + ReLU  (MXU matmul [H,F]@[F,TB], VPU max)
    h1 = jnp.dot(w1_ref[...], x, preferred_element_type=jnp.float32)
    h1 = jnp.maximum(h1 + b1_ref[...], 0.0)                     # [H, TB]

    # fc2 + ReLU
    h2 = jnp.dot(w2_ref[...], h1, preferred_element_type=jnp.float32)
    h2 = jnp.maximum(h2 + b2_ref[...], 0.0)                     # [F, TB]

    # fc3 (single output unit): VPU mul + 8-wide feature reduce instead of an
    # N=1 MXU pass (which would use 1/128..1/256 of the systolic array).
    logits = jnp.sum(w3_ref[...] * h2, axis=0, keepdims=True) + b3_ref[...]

    # Sigmoid: exp and approx reciprocal both go to the EUP slot.
    denom = 1.0 + jnp.exp(-logits)
    o_ref[...] = pl.reciprocal(denom, approx=True).astype(o_ref.dtype)


def meta_model_forward(x, params, *, num_models, num_classes, flattened=True,
                       batch_tile=128):
    """JAX wrapper mirroring MetaModelNN.forward.

    x: [batch, num_models * num_classes] if flattened else
       [batch, num_models, num_classes] (or anything reshapeable to it).
    Returns [batch, 1] float32, like the PyTorch module.
    """
    if not flattened:
        x = x.reshape(x.shape[0], num_models, num_classes)
        x = x.reshape(x.shape[0], -1)

    w1, b1 = params["w1"], params["b1"]          # [H, F], [H, 1]
    w2, b2 = params["w2"], params["b2"]          # [F, H], [F, 1]
    w3, b3 = params["w3"], params["b3"]          # [F, 1], [1, 1]

    batch = x.shape[0]
    feat = num_models * num_classes
    hidden = w1.shape[0]
    assert x.shape[1] == feat

    # Lane-dense layout: batch -> lanes. Pad batch up to a multiple of the
    # lane tile. (Layout plumbing only; the kernel sees dense [F, TB] tiles.)
    tb = max(128, batch_tile)
    padded = -(-batch // tb) * tb
    x_t = jnp.pad(x.astype(jnp.float32).T, ((0, 0), (0, padded - batch)))

    grid = (padded // tb,)
    resident = lambda a: pl.BlockSpec(a.shape, lambda i: (0, 0))  # stays in VMEM

    # NOTE: for large-batch inference on v6e/v7x, casting x/w1/w2 to bf16 (with
    # f32 accumulation) halves HBM traffic; kept f32 here for exact semantics.
    cost = pl.CostEstimate(
        flops=2 * batch * (2 * feat * hidden + feat),
        transcendentals=2 * batch,
        bytes_accessed=4 * (batch * feat + batch
                            + 2 * feat * hidden + hidden + 2 * feat + 1),
    )

    out_t = pl.pallas_call(
        _meta_model_kernel,
        out_shape=jax.ShapeDtypeStruct((1, padded), jnp.float32),
        grid_spec=pltpu.PrefetchScalarGridSpec(
            num_scalar_prefetch=0,
            grid=grid,
            in_specs=[
                pl.BlockSpec((feat, tb), lambda i: (0, i)),   # x tile, pipelined
                resident(w1), resident(b1),
                resident(w2), resident(b2),
                resident(w3), resident(b3),
            ],
            out_specs=pl.BlockSpec((1, tb), lambda i: (0, i)),  # lane-dense slab
        ),
        compiler_params=pltpu.CompilerParams(
            dimension_semantics=("parallel",),        # 2x on v7x (2 TCs/chip)
            vmem_limit_bytes=32 * 1024 * 1024,        # ample headroom on v7x
        ),
        cost_estimate=cost,
    )(x_t, w1, b1, w2, b2, w3, b3)

    # Back to the module's [batch, 1] output layout.
    return out_t[0, :batch].reshape(batch, 1)


def init_params(key, num_models, num_classes, hidden_scale=2):
    """nn.Linear-style init (U[-1/sqrt(fan_in), 1/sqrt(fan_in)]).

    Weights are stored PyTorch-style [out, in]; biases as columns [out, 1].
    """
    input_size = num_models * num_classes
    hidden_size = hidden_scale * input_size

    def linear_init(k, fan_in, fan_out):
        kw, kb = jax.random.split(k)
        bound = 1.0 / jnp.sqrt(fan_in)
        w = jax.random.uniform(kw, (fan_out, fan_in), jnp.float32,
                               minval=-bound, maxval=bound)
        b = jax.random.uniform(kb, (fan_out, 1), jnp.float32,
                               minval=-bound, maxval=bound)
        return w, b

    k1, k2, k3 = jax.random.split(key, 3)
    w1, b1 = linear_init(k1, input_size, hidden_size)   # [H, F], [H, 1]
    w2, b2 = linear_init(k2, hidden_size, input_size)   # [F, H], [F, 1]
    w3_r, b3 = linear_init(k3, input_size, 1)           # [1, F], [1, 1]
    w3 = w3_r.T                                          # store as column [F, 1]
    return {"w1": w1, "b1": b1, "w2": w2, "b2": b2, "w3": w3, "b3": b3}


def reference_forward(x, params):
    """Pure-JAX reference (standard [batch, features] layout)."""
    h1 = jnp.maximum(x @ params["w1"].T + params["b1"].T, 0.0)
    h2 = jnp.maximum(h1 @ params["w2"].T + params["b2"].T, 0.0)
    return jax.nn.sigmoid(h2 @ params["w3"] + params["b3"])


if __name__ == "__main__":
    num_models = 4      # p1..p4
    num_classes = 2     # entail / contradict
    hidden_scale = 2
    batch = 512         # 4 batch tiles of 128 lanes each

    key = jax.random.PRNGKey(0)
    kp, kx = jax.random.split(key)
    params = init_params(kp, num_models, num_classes, hidden_scale)

    # unflattened input [batch, num_models, num_classes]; wrapper flattens it
    x_unflat = jax.random.normal(kx, (batch, num_models, num_classes),
                                 jnp.float32)

    fwd = functools.partial(meta_model_forward, num_models=num_models,
                            num_classes=num_classes, flattened=False,
                            batch_tile=128)
    out = jax.block_until_ready(fwd(x_unflat, params))

    ref = reference_forward(x_unflat.reshape(batch, -1), params)
    assert out.shape == (batch, 1), out.shape
    # approx=True reciprocal (EUP vrcp) -> compare with a slightly loosened,
    # absolute tolerance on the [0,1] probabilities.
    assert jnp.allclose(out, ref, atol=5e-3, rtol=0.0), (
        float(jnp.max(jnp.abs(out - ref))))

    print("KERNEL_OK")
</pallas_src>

<mosaic_0001>
module attributes {stable_mosaic.version = 11 : i64} {
  func.func @_meta_model_kernel(%arg0: i32, %arg1: memref<8x128xf32, #tpu.memory_space<vmem>>, %arg2: memref<16x8xf32, #tpu.memory_space<vmem>>, %arg3: memref<16x1xf32, #tpu.memory_space<vmem>>, %arg4: memref<8x16xf32, #tpu.memory_space<vmem>>, %arg5: memref<8x1xf32, #tpu.memory_space<vmem>>, %arg6: memref<8x1xf32, #tpu.memory_space<vmem>>, %arg7: memref<1x1xf32, #tpu.memory_space<vmem>>, %arg8: memref<1x128xf32, #tpu.memory_space<vmem>>) attributes {dimension_semantics = [#tpu.dimension_semantics<parallel>], iteration_bounds = array<i64: 4>, scalar_prefetch = 0 : i64, scratch_operands = 0 : i64, tpu.core_type = #tpu.core_type<tc>, window_params = [{transform_indices = @transform_0, window_bounds = array<i64: 8, 128>}, {pipeline_mode = #tpu.pipeline_mode<synchronous>, transform_indices = @transform_1, window_bounds = array<i64: 16, 8>}, {pipeline_mode = #tpu.pipeline_mode<synchronous>, transform_indices = @transform_2, window_bounds = array<i64: 16, 1>}, {pipeline_mode = #tpu.pipeline_mode<synchronous>, transform_indices = @transform_3, window_bounds = array<i64: 8, 16>}, {pipeline_mode = #tpu.pipeline_mode<synchronous>, transform_indices = @transform_4, window_bounds = array<i64: 8, 1>}, {pipeline_mode = #tpu.pipeline_mode<synchronous>, transform_indices = @transform_5, window_bounds = array<i64: 8, 1>}, {pipeline_mode = #tpu.pipeline_mode<synchronous>, transform_indices = @transform_6, window_bounds = array<i64: 1, 1>}, {transform_indices = @transform_7, window_bounds = array<i64: 1, 128>}]} {
    %c0 = arith.constant 0 : index
    %c0_0 = arith.constant 0 : index
    %0 = vector.load %arg1[%c0, %c0_0] : memref<8x128xf32, #tpu.memory_space<vmem>>, vector<8x128xf32>
    %c0_1 = arith.constant 0 : index
    %c0_2 = arith.constant 0 : index
    %1 = vector.load %arg2[%c0_1, %c0_2] : memref<16x8xf32, #tpu.memory_space<vmem>>, vector<16x8xf32>
    %cst = arith.constant dense<0.000000e+00> : vector<16x128xf32>
    %2 = tpu.matmul %1, %0, %cst {dimension_numbers = #tpu.dot_dimension_numbers<[1], [0], [0], [1], [0, 0, 1, 1], [], []>} : vector<16x8xf32>, vector<8x128xf32>, vector<16x128xf32> -> vector<16x128xf32>
    %c0_3 = arith.constant 0 : index
    %c0_4 = arith.constant 0 : index
    %3 = vector.load %arg3[%c0_3, %c0_4] : memref<16x1xf32, #tpu.memory_space<vmem>>, vector<16x1xf32>
    %4 = vector.broadcast %3 : vector<16x1xf32> to vector<16x128xf32>
    %5 = arith.addf %2, %4 : vector<16x128xf32>
    %cst_5 = arith.constant 0.000000e+00 : f32
    %6 = vector.broadcast %cst_5 : f32 to vector<16x128xf32>
    %7 = arith.maximumf %5, %6 : vector<16x128xf32>
    %c0_6 = arith.constant 0 : index
    %c0_7 = arith.constant 0 : index
    %8 = vector.load %arg4[%c0_6, %c0_7] : memref<8x16xf32, #tpu.memory_space<vmem>>, vector<8x16xf32>
    %cst_8 = arith.constant dense<0.000000e+00> : vector<8x128xf32>
    %9 = tpu.matmul %8, %7, %cst_8 {dimension_numbers = #tpu.dot_dimension_numbers<[1], [0], [0], [1], [0, 0, 1, 1], [], []>} : vector<8x16xf32>, vector<16x128xf32>, vector<8x128xf32> -> vector<8x128xf32>
    %c0_9 = arith.constant 0 : index
    %c0_10 = arith.constant 0 : index
    %10 = vector.load %arg5[%c0_9, %c0_10] : memref<8x1xf32, #tpu.memory_space<vmem>>, vector<8x1xf32>
    %11 = vector.broadcast %10 : vector<8x1xf32> to vector<8x128xf32>
    %12 = arith.addf %9, %11 : vector<8x128xf32>
    %cst_11 = arith.constant 0.000000e+00 : f32
    %13 = vector.broadcast %cst_11 : f32 to vector<8x128xf32>
    %14 = arith.maximumf %12, %13 : vector<8x128xf32>
    %c0_12 = arith.constant 0 : index
    %c0_13 = arith.constant 0 : index
    %15 = vector.load %arg6[%c0_12, %c0_13] : memref<8x1xf32, #tpu.memory_space<vmem>>, vector<8x1xf32>
    %16 = vector.broadcast %15 : vector<8x1xf32> to vector<8x128xf32>
    %17 = arith.mulf %16, %14 : vector<8x128xf32>
    %cst_14 = arith.constant dense<0.000000e+00> : vector<128xf32>
    %18 = vector.multi_reduction <add>, %17, %cst_14 [0] : vector<8x128xf32> to vector<128xf32>
    %19 = vector.shape_cast %18 : vector<128xf32> to vector<1x128xf32>
    %c0_15 = arith.constant 0 : index
    %c0_16 = arith.constant 0 : index
    %20 = vector.load %arg7[%c0_15, %c0_16] : memref<1x1xf32, #tpu.memory_space<vmem>>, vector<1x1xf32>
    %21 = vector.broadcast %20 : vector<1x1xf32> to vector<1x128xf32>
    %22 = arith.addf %19, %21 : vector<1x128xf32>
    %cst_17 = arith.constant 0.000000e+00 : f32
    %23 = vector.broadcast %cst_17 : f32 to vector<1x128xf32>
    %24 = arith.subf %23, %22 : vector<1x128xf32>
    %25 = math.exp %24 : vector<1x128xf32>
    %cst_18 = arith.constant 1.000000e+00 : f32
    %26 = vector.broadcast %cst_18 : f32 to vector<1x128xf32>
    %27 = arith.addf %26, %25 : vector<1x128xf32>
    %28 = tpu.reciprocal %27 {approx = true} : vector<1x128xf32> -> vector<1x128xf32>
    %c0_19 = arith.constant 0 : index
    %c0_20 = arith.constant 0 : index
    %29 = vector.load %arg8[%c0_19, %c0_20] : memref<1x128xf32, #tpu.memory_space<vmem>>, vector<1x128xf32>
    tpu.vector_store %arg8[%c0_19, %c0_20], %28 {strides = array<i32>} : memref<1x128xf32, #tpu.memory_space<vmem>>, vector<1x128xf32>,
    return
  }
  func.func @transform_0(%arg0: i32) -> (i32, i32) {
    %c0_i32 = arith.constant 0 : i32
    %c0_i32_0 = arith.constant 0 : i32
    return %c0_i32, %arg0 : i32, i32
  }
  func.func @transform_1(%arg0: i32) -> (i32, i32) {
    %c0_i32 = arith.constant 0 : i32
    %c0_i32_0 = arith.constant 0 : i32
    %c0_i32_1 = arith.constant 0 : i32
    return %c0_i32, %c0_i32_0 : i32, i32
  }
  func.func @transform_2(%arg0: i32) -> (i32, i32) {
    %c0_i32 = arith.constant 0 : i32
    %c0_i32_0 = arith.constant 0 : i32
    %c0_i32_1 = arith.constant 0 : i32
    return %c0_i32, %c0_i32_0 : i32, i32
  }
  func.func @transform_3(%arg0: i32) -> (i32, i32) {
    %c0_i32 = arith.constant 0 : i32
    %c0_i32_0 = arith.constant 0 : i32
    %c0_i32_1 = arith.constant 0 : i32
    return %c0_i32, %c0_i32_0 : i32, i32
  }
  func.func @transform_4(%arg0: i32) -> (i32, i32) {
    %c0_i32 = arith.constant 0 : i32
    %c0_i32_0 = arith.constant 0 : i32
    %c0_i32_1 = arith.constant 0 : i32
    return %c0_i32, %c0_i32_0 : i32, i32
  }
  func.func @transform_5(%arg0: i32) -> (i32, i32) {
    %c0_i32 = arith.constant 0 : i32
    %c0_i32_0 = arith.constant 0 : i32
    %c0_i32_1 = arith.constant 0 : i32
    return %c0_i32, %c0_i32_0 : i32, i32
  }
  func.func @transform_6(%arg0: i32) -> (i32, i32) {
    %c0_i32 = arith.constant 0 : i32
    %c0_i32_0 = arith.constant 0 : i32
    %c0_i32_1 = arith.constant 0 : i32
    return %c0_i32, %c0_i32_0 : i32, i32
  }
  func.func @transform_7(%arg0: i32) -> (i32, i32) {
    %c0_i32 = arith.constant 0 : i32
    %c0_i32_0 = arith.constant 0 : i32
    return %c0_i32, %arg0 : i32, i32
  }
}

</mosaic_0001>

<bundles_post_ra>
// kernel: tpu_custom_call.1
= control target key start
LH: loop header
LB: loop body
LE: loop exit
PB: predicated region body
PF: predicated region fallthrough
CT: control target
= control target key end

     0   :  { %s870_s0 = inlined_call_operand.vmem [shape: f32[8,512], index: 0, kind: input, shape index: {}]   ;;  %s871_s1 = inlined_call_operand.vmem [shape: f32[16,8], index: 1, kind: input, shape index: {}]   ;;  %s872_s2 = inlined_call_operand.vmem [shape: f32[16,1], index: 2, kind: input, shape index: {}]   ;;  %s873_s3 = inlined_call_operand.vmem [shape: f32[8,16], index: 3, kind: input, shape index: {}]   ;;  %s874_s4 = inlined_call_operand.vmem [shape: f32[8,1], index: 4, kind: input, shape index: {}]   ;;  %s875_s5 = inlined_call_operand.vmem [shape: f32[8,1], index: 5, kind: input, shape index: {}]   ;;  %s876_s6 = inlined_call_operand.<no memory space> [shape: f32[1,1], index: 6, kind: input, shape index: {}]   ;;  %s877_s7 = inlined_call_operand.hbm [shape: f32[1,512], index: 7, kind: output, shape index: {}]  }
   0x1   :  { %v12_v0 = vstv %s876_s6 }
   0x2   :  { %13 = vst [vmem:[#allocation2] sm:$0x1] %v12_v0 }
   0x3   :  { %14 = vsyncpa [#allocation4], 0 }
   0x4   :  { %16 = vsyncpa [#allocation4 + $0x1], 0  ;;  %s747_s26 = smov 0   ;;  %s749_s27 = smov 0  }
   0x5   :  { %s751_s28 = smov 0   ;;  %s753_s29 = smov 0  }
   0x6 LB: > { %s768_s6 = sadd.s32 4294967295, %s697_s29   ;;  %s554_s30 = sadd.s32 4294967294, %s697_s29   ;;  %s697_s29 = sphi %s753_s29, %s883_s29   ;;  %s693_s28 = sphi %s751_s28, %s882_s28   ;;  %s689_s27 = sphi %s749_s27, %s881_s27   ;;  %s685_s26 = sphi %s747_s26, %s880_s26  }
   0x7   : > { %s772_s8 = sadd.s32 1, %s697_s29   ;;  %s181_s9 = sadd.s32 1, %s693_s28 }
   0x8   : > { %s178_s10 = ssub.s32 %s697_s29, %s772_s8  ;;  %p191_p0 = scmp.ne.s32.totalorder %s693_s28, %s689_s27 }
   0x9   : > { %p179_p1 = scmp.eq.s32.totalorder %s178_s10, 0  ;;  %p192_p2 = scmp.eq.s32.totalorder %s768_s6, 3 }
   0xa   : > { %p197_p3 = scmp.ne.s32.totalorder %s689_s27, %s685_s26  ;;  %p198_p4 = scmp.eq.s32.totalorder %s554_s30, 3 }
   0xb   : > { %s783_s11 = scalar_select %p179_p1, %s693_s28, %s181_s9  }
   0xc   : > { %p785_p5 = por %p192_p2, %p191_p0  ;;  %p789_p6 = por %p198_p4, %p197_p3 }
   0xd   : > { %p557_p7 = scmp.ge.s32.totalorder %s697_s29, 1  ;;  %p241_p8 = scmp.lt.s32.totalorder %s697_s29, 5 }
   0xf   : > { %p242_p9 = pnand %p557_p7, %p241_p8 }
  0x10   : > { %p271_p10 = scmp.lt.s32.totalorder (!%p242_p9), %s768_s6, 3  ;;  %v276_v1 = vld [vmem:[%s871_s1] sm:$0xff] (!%p242_p9)  ;;  %vm290_vm0 = vcmask (!%p242_p9), 64512   ;;  %v699_v3 = vmov (!%p242_p9), 0   ;;  %v279_v4 = vld [vmem:[%s872_s2 + $0x8] sm:$0xff] (!%p242_p9)  ;;  %v700_v8 = vmov (!%p242_p9), 0.0|0.0   ;;  %v475_v28 = vlaneseq (!%p242_p9) }
  0x11   : > { %245 = sbr.rel (%p242_p9) target bundleno = 527 (0x20f), region = 48  ;;  %v278_v2 = vld [vmem:[%s872_s2] sm:$0xff] (!%p242_p9)  ;;  %573 = vmatprep.mubr.msk.f32.mxu0 (!%p242_p9), %vm290_vm0, %v276_v1  ;;  %629 = vset.pattern.permute.xlu0 (!%p242_p9), %v699_v3  ;;  %v277_v6 = vld [vmem:[%s871_s1 + $0x8] sm:$0xff] (!%p242_p9)  ;;  %vm701_vm1 = vmmov (!%p242_p9), 0   ;;  %v702_v9 = vmov (!%p242_p9), 0.0   ;;  %vm381_vm2 = vcmask (!%p242_p9), 130048  }
  0x12   : > { %282 = vperm.xlu0 (!%p242_p9), %629, %v278_v2   ;;  %630 = vset.pattern.permute.xlu1 (!%p242_p9), %v699_v3  ;;  %v469_v7 = vld [vmem:[#allocation2] sm:$0x1] (!%p242_p9)  ;;  %v476_v31 = vshrl.u32 (!%p242_p9), %v475_v28, 7  ;;  %s562_s19 = sshll.u32 (!%p242_p9), %s768_s6, 4 }
  0x13   : > { %583 = vmatprep.subr.bf16.mxu1 (!%p242_p9), %v700_v8  ;;  %580 = vmatprep.mubr.msk.f32.mxu1 (!%p242_p9), %vm701_vm1, %v702_v9  ;;  %v375_v10 = vld [vmem:[%s874_s4] sm:$0xff] (!%p242_p9) }
  0x14   : > { %378 = vperm.xlu1 (!%p242_p9), %630, %v375_v10   ;;  %v456_v11 = vld [vmem:[%s875_s5] sm:$0xff] (!%p242_p9)  ;;  %v477_v34 = vsub.s32 (!%p242_p9), 0, %v476_v31 }
  0x15   : > { %v374_v21 = vld [vmem:[%s873_s3] sm:$0xff] (!%p242_p9) }
  0x16   : > { %287 = vperm.xlu0 (!%p242_p9), %629, %v279_v4  }
  0x18   : > { %s272_s18 = scalar_select %p271_p10, %s768_s6, 3  ;;  %459 = vperm.xlu1 %630, %v456_v11  }
  0x19   : > { %s703_s6 = smov [#allocation3]  }
  0x1a   : > { %s558_s21 = sshll.u32 %s272_s18, 3  ;;  %472 = vperm.xlu0 %629, %v469_v7   ;;  %s269_s18 = sand.u32 1, %s689_s27  }
  0x1b   : > { %s274_s24 = scalar_lea.vmem %s870_s0, %s558_s21  ;;  %s270_s20 = scalar_lea.vmem [#allocation3], %s269_s18 }
  0x1c   : > { %v275_v5 = vld [vmem:[%s274_s24] sm:$0xff]  ;;  %s499_s21 = sshll.u32 %s270_s20, 4  ;;  %s828_s24 = scalar_lea.hbm %s877_s7, %s562_s19  ;;  %s830_s21 = int_to_ptr.vmem [resolvable:$true] %s499_s21 }
  0x1d   : > { %571 = vmatprep.subr.mxu0 %v275_v5  ;;  %s487_s25 = scalar_lea.sflag [#allocation4], %s269_s18  ;;  %s635_s30 = scalar_lea.vmem %s830_s21, 16 }
  0x1e   : > { %572 = vmatpush3.msra.mxu0 %v275_v5  ;;  %p636_p11 = scmp.ne.s32.totalorder %s830_s21, %s635_s30  ;;  %s639_s9 = sshll.u32 %s703_s6, 4  ;;  %s640_s9 = int_to_ptr.vmem [resolvable:$false] %s639_s9 }
  0x1f   : > { %574 = vmatmul.mubr.msk.f32.vlgmr.msra.gmra.mrb[0].mxu0 %vm290_vm0, %v277_v6  ;;  %s641_s10 = scalar_lea.vmem %s640_s9, 32  ;;  %p642_p0 = scmp.lt.s32.totalorder %s830_s21, %s640_s9 }
  0x20   : > { %p637_p12 = pnand %p636_p11, %p785_p5  ;;  %p643_p1 = scmp.lt.s32.totalorder %s641_s10, %s635_s30 }
  0x22   : > { %p638_p13 = pneg %p637_p12  ;;  %p644_p2 = por %p643_p1, %p642_p0 }
  0x24   : > { %p645_p3 = pnand %p644_p2, %p638_p13 }
  0x91   : > { %v283_v12 = vpop.permute.xlu0 %282 }
  0x93   : > { %v379_v22 = vpop.permute.xlu1 %378 }
  0x95   : > { %v288_v13 = vpop.permute.xlu0 %287 }
  0x97   : > { %v460_v27 = vpop.permute.xlu1 %459 }
  0x99   : > { %v473_v36 = vpop.permute.xlu0 %472 }
  0x9a   : > { %v478_v38 = vrot.slane %v473_v36, %v477_v34 }
  0xf2   : > { %v575_v14 = vpop.f32.mrb[0].mxu0 }
  0xf3   : > { %v369_v15 = vadd.f32 %v575_v14, %v288_v13  ;;  %v363_v16 = vpop.f32.mrb[1].mxu0 }
  0xf4   : > { %v364_v17 = vadd.f32 %v363_v16, %v283_v12 }
  0xf5   : > { %v373_v18 = vmax.f32 %v369_v15, 0.0 }
  0xf6   : > { %v372_v19 = vmax.f32 %v364_v17, 0.0 }
  0xf8   : > { %v584_v20 = vpack.c.bf16 %v373_v18, %v372_v19 }
  0xfa   : > { %585 = vmatpush3.bf16.msra.mxu1 %v584_v20 }
  0xfd   : > { %581 = vmatmul.mubr.msk.f32.vlgmr.msra.gmra.mrb[0].mxu1 %vm381_vm2, %v374_v21 }
 0x1d0   : > { %v451_v23 = vpop.f32.mrb[0].mxu1 }
 0x1d1   : > { %v452_v24 = vadd.f32 %v451_v23, %v379_v22  ;;  %v582_v25 = vpop.f32.mrb[1].mxu1 }
 0x1d3   : > { %v455_v26 = vmax.f32 %v452_v24, 0.0 }
 0x1d5   : > { %v462_v29 = vmul.f32 %v460_v27, %v455_v26 }
 0x1d7   : > { %v463_v30 = vrot.slane %v462_v29, 4 }
 0x1d9   : > { %v464_v32 = vadd.f32 %v463_v30, %v462_v29 }
 0x1db   : > { %v465_v33 = vrot.slane %v464_v32, 2 }
 0x1dd   : > { %v466_v35 = vadd.f32 %v465_v33, %v464_v32 }
 0x1df   : > { %v467_v37 = vrot.slane %v466_v35, 1 }
 0x1e1   : > { %v468_v39 = vadd.f32 %v467_v37, %v466_v35 }
 0x1e3   : > { %v479_v40 = vadd.f32 %v478_v38, %v468_v39 }
 0x1e5   : > { %v480_v41 = vsub.f32 0.0, %v479_v40 }
 0x1e7   : > { %v481_v42 = vmul.f32 1.442695, %v480_v41 }
 0x1e9   : > { %631 = vpow2.f32 %v481_v42 }
 0x1f3   : > { %v632_v43 = vpop.eup %631 }
 0x1f4   : > { %v483_v44 = vadd.f32 1.0, %v632_v43 }
 0x1f6   : > { %633 = vrcp.f32 %v483_v44 }
 0x200   : > { %v634_v45 = vpop.eup %633 }
 0x201   : > { %485 = vst [vmem:[%s270_s20] sm:$0x1] %v634_v45 }
 0x202   : > { %648 = shalt.err (!%p645_p3)
}
 0x203   : > { %s649_s14 = scalar_lea.hbm %s828_s24, 16  ;;  %s653_s17 = scalar_lea.hbm %s877_s7, 64 }
 0x204   : > { %p650_p4 = scmp.ne.s32.totalorder %s828_s24, %s649_s14  ;;  %p654_p9 = scmp.lt.u32.totalorder %s828_s24, %s877_s7 }
 0x205   : > { %p655_p10 = scmp.lt.u32.totalorder %s653_s17, %s649_s14  ;;  %p657_p12 = scmp.lt.u32.totalorder %s649_s14, %s828_s24 }
 0x206   : > { %p651_p7 = pnand %p650_p4, %p785_p5 }
 0x207   : > { %p656_p11 = por %p655_p10, %p654_p9 }
 0x208   : > { %p652_p8 = pneg %p651_p7 }
 0x209   : > { %p658_p13 = por %p657_p12, %p656_p11 }
 0x20b   : > { %p659_p0 = pnand %p658_p13, %p652_p8 }
 0x20d   : > { %662 = shalt.err (!%p659_p0)
}
 0x20e   : > { %586 = dma.vmem_to_hbm [thread:$0]  (%p785_p5), %s830_s21, 16, %s828_s24, %s487_s25  }
 0x20f PF: > { %p592_p1 = scmp.ge.s32.totalorder %s697_s29, 2  ;;  %s511_s20 = sand.u32 1, %s685_s26  }
 0x210   : > { %s512_s22 = scalar_lea.sflag [#allocation4], %s511_s20 }
 0x211   : > { %p589_p2 = pnand %p592_p1, %p789_p6 }
 0x213   : > { %680 = dma.done.wait (!%p589_p2), %s512_s22, 16  }
 0x214   : > { %682 = vsyncadd (!%p589_p2), %s512_s22, 4294967280  ;;  %p19_p3 = scmp.ge.s32.totalorder %s772_s8, 6   ;;  %s880_s26 = smov %s689_s27 }
 0x215   : > { %s881_s27 = smov %s693_s28  ;;  %s882_s28 = smov %s783_s11 }
 0x216   : > { %s883_s29 = smov %s772_s8  ;;  %21 = sbr.rel (!%p19_p3) target bundleno = 6 (0x6), region = 83 }
 0x21d   :  { %516 = vsyncpa [#allocation4], 1 }
 0x21e   :  { %518 = vsyncpa [#allocation4 + $0x1], 1 }

</bundles_post_ra>
